<compile_context>
chip_gen: v5e
topology: v5e:2x2
jax: 0.10.0
libtpu: 0.0.40
codegen_flags: <defaults>
</compile_context>

<pallas_src>
import jax
import jax.numpy as jnp
from jax import lax
from jax.experimental import pallas as pl
from jax.experimental.pallas import tpu as pltpu

DROPOUT_P = 0.2
BN_EPS = 1e-5
_LANE = 128
_KEEP_SCALE = 1.0 / (1.0 - DROPOUT_P)
_DROP_THRESH = int(DROPOUT_P * (1 << 24))   # keep iff 24-bit uniform >= thresh


def _mix32(x):
    """lowbias32 integer mixer (portable: plain 32-bit VPU ops, no pltpu PRNG)."""
    x = x ^ (x >> jnp.uint32(16))
    x = x * jnp.uint32(0x7FEB352D)
    x = x ^ (x >> jnp.uint32(15))
    x = x * jnp.uint32(0x846CA68B)
    x = x ^ (x >> jnp.uint32(16))
    return x


def _dropout_keep_mask(seed_scalar, global_row0, shape, n_pad):
    """Deterministic per-element keep mask from a counter-based hash.

    The hash input is the *global* (row, col) element index, so tiles never
    reuse the same bitstream regardless of how the batch is tiled.
    """
    row = lax.broadcasted_iota(jnp.int32, shape, 0) + global_row0
    col = lax.broadcasted_iota(jnp.int32, shape, 1)
    idx = (row * n_pad + col).astype(jnp.uint32)
    key = seed_scalar.astype(jnp.uint32) * jnp.uint32(0x9E3779B9)
    bits = _mix32(idx + key)
    # integer threshold compare: keep iff uniform >= p  (no float conversion)
    return (bits >> jnp.uint32(8)).astype(jnp.int32) >= _DROP_THRESH


def _pick_tile_b(batch):
    """Largest batch tile <= 512 that divides B (multiple of 8), else full B."""
    for t in (512, 256, 128, 64, 32, 16, 8):
        if batch % t == 0:
            return t
    return batch


def dense_forward(x, w, b, gamma, beta, seed):
    """x: (B, n_in) f32, w: (n_in, n_out) f32, b/gamma/beta: (1, n_out) f32,
    seed: (1,) int32.  Returns (B, n_out) f32."""
    B, n_in = x.shape
    n_out = w.shape[1]

    # ---- lane-dense padding of the feature axis to a multiple of 128 ----
    n_pad = ((n_out + _LANE - 1) // _LANE) * _LANE
    pad = n_pad - n_out
    if pad:
        w = jnp.pad(w, ((0, 0), (0, pad)))
        b = jnp.pad(b, ((0, 0), (0, pad)))
        gamma = jnp.pad(gamma, ((0, 0), (0, pad)))
        beta = jnp.pad(beta, ((0, 0), (0, pad)))

    # bf16 operands for the MXU (f32 accumulation); halves x/W DMA bytes.
    x16 = x.astype(jnp.bfloat16)
    w16 = w.astype(jnp.bfloat16)

    tile_b = _pick_tile_b(B)
    nb = B // tile_b
    inv_n = 1.0 / B   # full-batch normalizer (biased variance, like torch BN)

    def kernel(seed_ref, x_ref, w_ref, b_ref, g_ref, bt_ref, o_ref,
               sum_ref, ssq_ref, scale_ref, shift_ref):
        phase = pl.program_id(0)   # 0 = accumulate stats, 1 = normalize
        bidx = pl.program_id(1)    # batch tile

        # ---- Linear: bf16 MXU matmul, f32 accumulate, f32 bias add ----
        y = jnp.dot(x_ref[...], w_ref[...],
                    preferred_element_type=jnp.float32) + b_ref[...]

        # ---- phase 0: one-pass full-batch sum / sum-of-squares ----
        @pl.when(jnp.logical_and(phase == 0, bidx == 0))
        def _init():
            sum_ref[...] = jnp.zeros_like(sum_ref)
            ssq_ref[...] = jnp.zeros_like(ssq_ref)

        @pl.when(phase == 0)
        def _stats():
            sum_ref[...] += jnp.sum(y, axis=0, keepdims=True)
            ssq_ref[...] += jnp.sum(y * y, axis=0, keepdims=True)
            o_ref[...] = y   # placeholder block; overwritten in phase 1

        # ---- phase 1: fold BN into per-feature scale/shift once ----
        @pl.when(jnp.logical_and(phase == 1, bidx == 0))
        def _fold():
            mean = sum_ref[...] * inv_n
            var = jnp.maximum(ssq_ref[...] * inv_n - mean * mean, 0.0)
            scale = g_ref[...] * lax.rsqrt(var + BN_EPS)
            scale_ref[...] = scale
            shift_ref[...] = bt_ref[...] - mean * scale

        # ---- phase 1: normalize, ReLU, dropout, lane-dense store ----
        @pl.when(phase == 1)
        def _norm():
            z = jnp.maximum(y * scale_ref[...] + shift_ref[...], 0.0)
            keep = _dropout_keep_mask(seed_ref[0], bidx * tile_b, z.shape, n_pad)
            o_ref[...] = jnp.where(keep, z * _KEEP_SCALE, 0.0)

    grid_spec = pltpu.PrefetchScalarGridSpec(
        num_scalar_prefetch=1,            # seed lives in SMEM
        grid=(2, nb),                     # (phase, batch-tile); last axis innermost
        in_specs=[
            pl.BlockSpec((tile_b, n_in), lambda p, i, s: (i, 0)),   # x tile
            pl.BlockSpec((n_in, n_pad), lambda p, i, s: (0, 0)),    # W (resident)
            pl.BlockSpec((1, n_pad), lambda p, i, s: (0, 0)),       # bias
            pl.BlockSpec((1, n_pad), lambda p, i, s: (0, 0)),       # gamma
            pl.BlockSpec((1, n_pad), lambda p, i, s: (0, 0)),       # beta
        ],
        out_specs=pl.BlockSpec((tile_b, n_pad), lambda p, i, s: (i, 0)),
        scratch_shapes=[pltpu.VMEM((1, n_pad), jnp.float32)] * 4,
    )

    out = pl.pallas_call(
        kernel,
        out_shape=jax.ShapeDtypeStruct((B, n_pad), jnp.float32),
        grid_spec=grid_spec,
        # Both axes carry a sequential dependency (phase order + full-batch
        # stats accumulation in scratch), so they must stay "arbitrary".
        compiler_params=pltpu.CompilerParams(
            dimension_semantics=("arbitrary", "arbitrary")),
    )(seed, x16, w16, b, gamma, beta)

    return out[:, :n_out]


if __name__ == "__main__":
    B, n_in, n_out = 8, 32, 64

    key = jax.random.PRNGKey(0)
    kx, kw, kb = jax.random.split(key, 3)

    x = jax.random.normal(kx, (B, n_in), dtype=jnp.float32)

    # nn.Linear default init: U(-1/sqrt(n_in), 1/sqrt(n_in)) for weight & bias
    bound = 1.0 / (n_in ** 0.5)
    w = jax.random.uniform(kw, (n_in, n_out), jnp.float32, -bound, bound)
    b = jax.random.uniform(kb, (1, n_out), jnp.float32, -bound, bound)

    # nn.BatchNorm1d default init: gamma = 1, beta = 0
    gamma = jnp.ones((1, n_out), dtype=jnp.float32)
    beta = jnp.zeros((1, n_out), dtype=jnp.float32)

    seed = jnp.array([0], dtype=jnp.int32)

    out = dense_forward(x, w, b, gamma, beta, seed)
    jax.block_until_ready(out)
    assert out.shape == (B, n_out)

    # Pure-JAX reference (same bf16 matmul + same hash-based dropout mask).
    n_pad = ((n_out + _LANE - 1) // _LANE) * _LANE
    y = jnp.dot(x.astype(jnp.bfloat16), w.astype(jnp.bfloat16),
                preferred_element_type=jnp.float32) + b
    mean = jnp.mean(y, axis=0, keepdims=True)
    var = jnp.maximum(jnp.mean(y * y, axis=0, keepdims=True) - mean * mean, 0.0)
    z = jnp.maximum((y - mean) * lax.rsqrt(var + BN_EPS) * gamma + beta, 0.0)
    keep = _dropout_keep_mask(seed[0], 0, (B, n_pad), n_pad)[:, :n_out]
    ref = jnp.where(keep, z * _KEEP_SCALE, 0.0)
    assert bool(jnp.allclose(out, ref, atol=1e-3, rtol=1e-3)), (
        float(jnp.max(jnp.abs(out - ref))))

    print("KERNEL_OK")
</pallas_src>

<mosaic_0001>
module attributes {stable_mosaic.version = 11 : i64} {
  func.func @kernel(%arg0: i32, %arg1: i32, %arg2: memref<1xi32, #tpu.memory_space<smem>>, %arg3: memref<8x32xbf16, #tpu.memory_space<vmem>>, %arg4: memref<32x128xbf16, #tpu.memory_space<vmem>>, %arg5: memref<1x128xf32, #tpu.memory_space<vmem>>, %arg6: memref<1x128xf32, #tpu.memory_space<vmem>>, %arg7: memref<1x128xf32, #tpu.memory_space<vmem>>, %arg8: memref<8x128xf32, #tpu.memory_space<vmem>>, %arg9: memref<1x128xf32, #tpu.memory_space<vmem>>, %arg10: memref<1x128xf32, #tpu.memory_space<vmem>>, %arg11: memref<1x128xf32, #tpu.memory_space<vmem>>, %arg12: memref<1x128xf32, #tpu.memory_space<vmem>>) attributes {dimension_semantics = [#tpu.dimension_semantics<arbitrary>, #tpu.dimension_semantics<arbitrary>], iteration_bounds = array<i64: 2, 1>, scalar_prefetch = 1 : i64, scratch_operands = 4 : i64, tpu.core_type = #tpu.core_type<tc>, window_params = [{transform_indices = @transform_0, window_bounds = array<i64: 8, 32>}, {pipeline_mode = #tpu.pipeline_mode<synchronous>, transform_indices = @transform_1, window_bounds = array<i64: 32, 128>}, {pipeline_mode = #tpu.pipeline_mode<synchronous>, transform_indices = @transform_2, window_bounds = array<i64: 1, 128>}, {pipeline_mode = #tpu.pipeline_mode<synchronous>, transform_indices = @transform_3, window_bounds = array<i64: 1, 128>}, {pipeline_mode = #tpu.pipeline_mode<synchronous>, transform_indices = @transform_4, window_bounds = array<i64: 1, 128>}, {transform_indices = @transform_5, window_bounds = array<i64: 8, 128>}]} {
    %c0 = arith.constant 0 : index
    %c0_0 = arith.constant 0 : index
    %0 = vector.load %arg3[%c0, %c0_0] : memref<8x32xbf16, #tpu.memory_space<vmem>>, vector<8x32xbf16>
    %c0_1 = arith.constant 0 : index
    %c0_2 = arith.constant 0 : index
    %1 = vector.load %arg4[%c0_1, %c0_2] : memref<32x128xbf16, #tpu.memory_space<vmem>>, vector<32x128xbf16>
    %cst = arith.constant dense<0.000000e+00> : vector<8x128xf32>
    %2 = tpu.matmul %0, %1, %cst {dimension_numbers = #tpu.dot_dimension_numbers<[1], [0], [0], [1], [0, 0, 1, 1], [], []>} : vector<8x32xbf16>, vector<32x128xbf16>, vector<8x128xf32> -> vector<8x128xf32>
    %c0_3 = arith.constant 0 : index
    %c0_4 = arith.constant 0 : index
    %3 = vector.load %arg5[%c0_3, %c0_4] : memref<1x128xf32, #tpu.memory_space<vmem>>, vector<1x128xf32>
    %4 = vector.broadcast %3 : vector<1x128xf32> to vector<8x128xf32>
    %5 = arith.addf %2, %4 : vector<8x128xf32>
    %c0_i32 = arith.constant 0 : i32
    %6 = arith.cmpi eq, %arg0, %c0_i32 : i32
    %c0_i32_5 = arith.constant 0 : i32
    %7 = arith.cmpi eq, %arg1, %c0_i32_5 : i32
    %8 = arith.andi %6, %7 : i1
    %9 = arith.extui %8 : i1 to i32
    %c0_i32_6 = arith.constant 0 : i32
    %10 = arith.cmpi ne, %9, %c0_i32_6 : i32
    scf.if %10 {
      %cst_13 = arith.constant 0.000000e+00 : f32
      %22 = vector.broadcast %cst_13 : f32 to vector<1x128xf32>
      %c0_14 = arith.constant 0 : index
      %c0_15 = arith.constant 0 : index
      %23 = vector.load %arg9[%c0_14, %c0_15] : memref<1x128xf32, #tpu.memory_space<vmem>>, vector<1x128xf32>
      tpu.vector_store %arg9[%c0_14, %c0_15], %22 {strides = array<i32>} : memref<1x128xf32, #tpu.memory_space<vmem>>, vector<1x128xf32>,
      %cst_16 = arith.constant 0.000000e+00 : f32
      %24 = vector.broadcast %cst_16 : f32 to vector<1x128xf32>
      %c0_17 = arith.constant 0 : index
      %c0_18 = arith.constant 0 : index
      %25 = vector.load %arg10[%c0_17, %c0_18] : memref<1x128xf32, #tpu.memory_space<vmem>>, vector<1x128xf32>
      tpu.vector_store %arg10[%c0_17, %c0_18], %24 {strides = array<i32>} : memref<1x128xf32, #tpu.memory_space<vmem>>, vector<1x128xf32>,
    } else {
    }
    %c0_i32_7 = arith.constant 0 : i32
    %11 = arith.cmpi eq, %arg0, %c0_i32_7 : i32
    %12 = arith.extui %11 : i1 to i32
    %c0_i32_8 = arith.constant 0 : i32
    %13 = arith.cmpi ne, %12, %c0_i32_8 : i32
    scf.if %13 {
      %c0_13 = arith.constant 0 : index
      %c0_14 = arith.constant 0 : index
      %22 = vector.load %arg9[%c0_13, %c0_14] : memref<1x128xf32, #tpu.memory_space<vmem>>, vector<1x128xf32>
      %cst_15 = arith.constant dense<0.000000e+00> : vector<128xf32>
      %23 = vector.multi_reduction <add>, %5, %cst_15 [0] : vector<8x128xf32> to vector<128xf32>
      %24 = vector.shape_cast %23 : vector<128xf32> to vector<1x128xf32>
      %25 = arith.addf %22, %24 : vector<1x128xf32>
      %c0_16 = arith.constant 0 : index
      %c0_17 = arith.constant 0 : index
      %26 = vector.load %arg9[%c0_16, %c0_17] : memref<1x128xf32, #tpu.memory_space<vmem>>, vector<1x128xf32>
      tpu.vector_store %arg9[%c0_16, %c0_17], %25 {strides = array<i32>} : memref<1x128xf32, #tpu.memory_space<vmem>>, vector<1x128xf32>,
      %c0_18 = arith.constant 0 : index
      %c0_19 = arith.constant 0 : index
      %27 = vector.load %arg10[%c0_18, %c0_19] : memref<1x128xf32, #tpu.memory_space<vmem>>, vector<1x128xf32>
      %28 = arith.mulf %5, %5 : vector<8x128xf32>
      %cst_20 = arith.constant dense<0.000000e+00> : vector<128xf32>
      %29 = vector.multi_reduction <add>, %28, %cst_20 [0] : vector<8x128xf32> to vector<128xf32>
      %30 = vector.shape_cast %29 : vector<128xf32> to vector<1x128xf32>
      %31 = arith.addf %27, %30 : vector<1x128xf32>
      %c0_21 = arith.constant 0 : index
      %c0_22 = arith.constant 0 : index
      %32 = vector.load %arg10[%c0_21, %c0_22] : memref<1x128xf32, #tpu.memory_space<vmem>>, vector<1x128xf32>
      tpu.vector_store %arg10[%c0_21, %c0_22], %31 {strides = array<i32>} : memref<1x128xf32, #tpu.memory_space<vmem>>, vector<1x128xf32>,
      %c0_23 = arith.constant 0 : index
      %c0_24 = arith.constant 0 : index
      %33 = vector.load %arg8[%c0_23, %c0_24] : memref<8x128xf32, #tpu.memory_space<vmem>>, vector<8x128xf32>
      tpu.vector_store %arg8[%c0_23, %c0_24], %5 {strides = array<i32>} : memref<8x128xf32, #tpu.memory_space<vmem>>, vector<8x128xf32>,
    } else {
    }
    %c1_i32 = arith.constant 1 : i32
    %14 = arith.cmpi eq, %arg0, %c1_i32 : i32
    %c0_i32_9 = arith.constant 0 : i32
    %15 = arith.cmpi eq, %arg1, %c0_i32_9 : i32
    %16 = arith.andi %14, %15 : i1
    %17 = arith.extui %16 : i1 to i32
    %c0_i32_10 = arith.constant 0 : i32
    %18 = arith.cmpi ne, %17, %c0_i32_10 : i32
    scf.if %18 {
      %c0_13 = arith.constant 0 : index
      %c0_14 = arith.constant 0 : index
      %22 = vector.load %arg9[%c0_13, %c0_14] : memref<1x128xf32, #tpu.memory_space<vmem>>, vector<1x128xf32>
      %cst_15 = arith.constant 1.250000e-01 : f32
      %23 = vector.broadcast %cst_15 : f32 to vector<1x128xf32>
      %24 = arith.mulf %22, %23 : vector<1x128xf32>
      %c0_16 = arith.constant 0 : index
      %c0_17 = arith.constant 0 : index
      %25 = vector.load %arg10[%c0_16, %c0_17] : memref<1x128xf32, #tpu.memory_space<vmem>>, vector<1x128xf32>
      %cst_18 = arith.constant 1.250000e-01 : f32
      %26 = vector.broadcast %cst_18 : f32 to vector<1x128xf32>
      %27 = arith.mulf %25, %26 : vector<1x128xf32>
      %28 = arith.mulf %24, %24 : vector<1x128xf32>
      %29 = arith.subf %27, %28 : vector<1x128xf32>
      %cst_19 = arith.constant 0.000000e+00 : f32
      %30 = vector.broadcast %cst_19 : f32 to vector<1x128xf32>
      %31 = arith.maximumf %29, %30 : vector<1x128xf32>
      %c0_20 = arith.constant 0 : index
      %c0_21 = arith.constant 0 : index
      %32 = vector.load %arg6[%c0_20, %c0_21] : memref<1x128xf32, #tpu.memory_space<vmem>>, vector<1x128xf32>
      %cst_22 = arith.constant 9.99999974E-6 : f32
      %33 = vector.broadcast %cst_22 : f32 to vector<1x128xf32>
      %34 = arith.addf %31, %33 : vector<1x128xf32>
      %35 = math.rsqrt %34 : vector<1x128xf32>
      %36 = arith.mulf %32, %35 : vector<1x128xf32>
      %c0_23 = arith.constant 0 : index
      %c0_24 = arith.constant 0 : index
      %37 = vector.load %arg11[%c0_23, %c0_24] : memref<1x128xf32, #tpu.memory_space<vmem>>, vector<1x128xf32>
      tpu.vector_store %arg11[%c0_23, %c0_24], %36 {strides = array<i32>} : memref<1x128xf32, #tpu.memory_space<vmem>>, vector<1x128xf32>,
      %c0_25 = arith.constant 0 : index
      %c0_26 = arith.constant 0 : index
      %38 = vector.load %arg7[%c0_25, %c0_26] : memref<1x128xf32, #tpu.memory_space<vmem>>, vector<1x128xf32>
      %39 = arith.mulf %24, %36 : vector<1x128xf32>
      %40 = arith.subf %38, %39 : vector<1x128xf32>
      %c0_27 = arith.constant 0 : index
      %c0_28 = arith.constant 0 : index
      %41 = vector.load %arg12[%c0_27, %c0_28] : memref<1x128xf32, #tpu.memory_space<vmem>>, vector<1x128xf32>
      tpu.vector_store %arg12[%c0_27, %c0_28], %40 {strides = array<i32>} : memref<1x128xf32, #tpu.memory_space<vmem>>, vector<1x128xf32>,
    } else {
    }
    %c1_i32_11 = arith.constant 1 : i32
    %19 = arith.cmpi eq, %arg0, %c1_i32_11 : i32
    %20 = arith.extui %19 : i1 to i32
    %c0_i32_12 = arith.constant 0 : i32
    %21 = arith.cmpi ne, %20, %c0_i32_12 : i32
    scf.if %21 {
      %c0_13 = arith.constant 0 : index
      %c0_14 = arith.constant 0 : index
      %22 = vector.load %arg11[%c0_13, %c0_14] : memref<1x128xf32, #tpu.memory_space<vmem>>, vector<1x128xf32>
      %23 = vector.broadcast %22 : vector<1x128xf32> to vector<8x128xf32>
      %24 = arith.mulf %5, %23 : vector<8x128xf32>
      %c0_15 = arith.constant 0 : index
      %c0_16 = arith.constant 0 : index
      %25 = vector.load %arg12[%c0_15, %c0_16] : memref<1x128xf32, #tpu.memory_space<vmem>>, vector<1x128xf32>
      %26 = vector.broadcast %25 : vector<1x128xf32> to vector<8x128xf32>
      %27 = arith.addf %24, %26 : vector<8x128xf32>
      %cst_17 = arith.constant 0.000000e+00 : f32
      %28 = vector.broadcast %cst_17 : f32 to vector<8x128xf32>
      %29 = arith.maximumf %27, %28 : vector<8x128xf32>
      %c0_18 = arith.constant 0 : index
      %30 = memref.load %arg2[%c0_18] : memref<1xi32, #tpu.memory_space<smem>>
      %c8_i32 = arith.constant 8 : i32
      %31 = arith.muli %arg1, %c8_i32 : i32
      %32 = tpu.iota {dimensions = array<i32: 0>} : vector<8x128xi32>
      %33 = vector.broadcast %31 : i32 to vector<8x128xi32>
      %34 = arith.addi %32, %33 : vector<8x128xi32>
      %35 = tpu.iota {dimensions = array<i32: 1>} : vector<8x128xi32>
      %c128_i32 = arith.constant 128 : i32
      %36 = vector.broadcast %c128_i32 : i32 to vector<8x128xi32>
      %37 = arith.muli %34, %36 : vector<8x128xi32>
      %38 = arith.addi %37, %35 : vector<8x128xi32>
      %c-1640531527_i32 = arith.constant -1640531527 : i32
      %39 = arith.muli %30, %c-1640531527_i32 : i32
      %40 = vector.broadcast %39 : i32 to vector<8x128xi32>
      %41 = arith.addi %38, %40 : vector<8x128xi32>
      %c16_i32 = arith.constant 16 : i32
      %42 = vector.broadcast %c16_i32 : i32 to vector<8x128xi32>
      %43 = arith.shrui %41, %42 : vector<8x128xi32>
      %44 = arith.xori %41, %43 : vector<8x128xi32>
      %c2146121005_i32 = arith.constant 2146121005 : i32
      %45 = vector.broadcast %c2146121005_i32 : i32 to vector<8x128xi32>
      %46 = arith.muli %44, %45 : vector<8x128xi32>
      %c15_i32 = arith.constant 15 : i32
      %47 = vector.broadcast %c15_i32 : i32 to vector<8x128xi32>
      %48 = arith.shrui %46, %47 : vector<8x128xi32>
      %49 = arith.xori %46, %48 : vector<8x128xi32>
      %c-2073254261_i32 = arith.constant -2073254261 : i32
      %50 = vector.broadcast %c-2073254261_i32 : i32 to vector<8x128xi32>
      %51 = arith.muli %49, %50 : vector<8x128xi32>
      %c16_i32_19 = arith.constant 16 : i32
      %52 = vector.broadcast %c16_i32_19 : i32 to vector<8x128xi32>
      %53 = arith.shrui %51, %52 : vector<8x128xi32>
      %54 = arith.xori %51, %53 : vector<8x128xi32>
      %c8_i32_20 = arith.constant 8 : i32
      %55 = vector.broadcast %c8_i32_20 : i32 to vector<8x128xi32>
      %56 = arith.shrui %54, %55 : vector<8x128xi32>
      %c3355443_i32 = arith.constant 3355443 : i32
      %57 = vector.broadcast %c3355443_i32 : i32 to vector<8x128xi32>
      %58 = arith.cmpi sge, %56, %57 : vector<8x128xi32>
      %cst_21 = arith.constant 1.250000e+00 : f32
      %59 = vector.broadcast %cst_21 : f32 to vector<8x128xf32>
      %60 = arith.mulf %29, %59 : vector<8x128xf32>
      %cst_22 = arith.constant 0.000000e+00 : f32
      %61 = vector.broadcast %cst_22 : f32 to vector<8x128xf32>
      %62 = arith.select %58, %60, %61 : vector<8x128xi1>, vector<8x128xf32>
      %c0_23 = arith.constant 0 : index
      %c0_24 = arith.constant 0 : index
      %63 = vector.load %arg8[%c0_23, %c0_24] : memref<8x128xf32, #tpu.memory_space<vmem>>, vector<8x128xf32>
      tpu.vector_store %arg8[%c0_23, %c0_24], %62 {strides = array<i32>} : memref<8x128xf32, #tpu.memory_space<vmem>>, vector<8x128xf32>,
    } else {
    }
    return
  }
  func.func @transform_0(%arg0: i32, %arg1: i32, %arg2: memref<1xi32, #tpu.memory_space<smem>>) -> (i32, i32) {
    %c0_i32 = arith.constant 0 : i32
    %c0_i32_0 = arith.constant 0 : i32
    return %arg1, %c0_i32 : i32, i32
  }
  func.func @transform_1(%arg0: i32, %arg1: i32, %arg2: memref<1xi32, #tpu.memory_space<smem>>) -> (i32, i32) {
    %c0_i32 = arith.constant 0 : i32
    %c0_i32_0 = arith.constant 0 : i32
    %c0_i32_1 = arith.constant 0 : i32
    return %c0_i32, %c0_i32_0 : i32, i32
  }
  func.func @transform_2(%arg0: i32, %arg1: i32, %arg2: memref<1xi32, #tpu.memory_space<smem>>) -> (i32, i32) {
    %c0_i32 = arith.constant 0 : i32
    %c0_i32_0 = arith.constant 0 : i32
    %c0_i32_1 = arith.constant 0 : i32
    return %c0_i32, %c0_i32_0 : i32, i32
  }
  func.func @transform_3(%arg0: i32, %arg1: i32, %arg2: memref<1xi32, #tpu.memory_space<smem>>) -> (i32, i32) {
    %c0_i32 = arith.constant 0 : i32
    %c0_i32_0 = arith.constant 0 : i32
    %c0_i32_1 = arith.constant 0 : i32
    return %c0_i32, %c0_i32_0 : i32, i32
  }
  func.func @transform_4(%arg0: i32, %arg1: i32, %arg2: memref<1xi32, #tpu.memory_space<smem>>) -> (i32, i32) {
    %c0_i32 = arith.constant 0 : i32
    %c0_i32_0 = arith.constant 0 : i32
    %c0_i32_1 = arith.constant 0 : i32
    return %c0_i32, %c0_i32_0 : i32, i32
  }
  func.func @transform_5(%arg0: i32, %arg1: i32, %arg2: memref<1xi32, #tpu.memory_space<smem>>) -> (i32, i32) {
    %c0_i32 = arith.constant 0 : i32
    %c0_i32_0 = arith.constant 0 : i32
    return %arg1, %c0_i32 : i32, i32
  }
}

</mosaic_0001>

<bundles_post_ra>
// kernel: tpu_custom_call.1
= control target key start
LH: loop header
LB: loop body
LE: loop exit
PB: predicated region body
PF: predicated region fallthrough
CT: control target
= control target key end

     0   :  { %s804_s0 = inlined_call_operand.<no memory space> [shape: s32[1], index: 0, kind: input, shape index: {}]   ;;  %s805_s1 = inlined_call_operand.hbm [shape: bf16[8,32], index: 1, kind: input, shape index: {}]   ;;  %s806_s2 = inlined_call_operand.hbm [shape: bf16[32,128], index: 2, kind: input, shape index: {}]   ;;  %s807_s3 = inlined_call_operand.vmem [shape: f32[1,128], index: 3, kind: input, shape index: {}]   ;;  %s808_s4 = inlined_call_operand.vmem [shape: f32[1,128], index: 4, kind: input, shape index: {}]   ;;  %s809_s5 = inlined_call_operand.vmem [shape: f32[1,128], index: 5, kind: input, shape index: {}]   ;;  %s810_s6 = inlined_call_operand.hbm [shape: f32[8,128], index: 6, kind: output, shape index: {}]  }
   0x1   :  { %11 = sst [smem:[#allocation7]] %s804_s0 }
   0x2   :  { %12 = vsyncpa [#allocation9], 0 }
   0x3   :  { %13 = vsyncpa [#allocation12], 0 }
   0x4   :  { %14 = vsyncpa [#allocation10], 0  ;;  %s718_s23 = smov 0   ;;  %s720_s24 = smov 0  }
   0x5   :  { %s722_s25 = smov 0  }
   0x6 LB: > { %s462_s0 = sadd.s32 4294967295, %s672_s25   ;;  %s32_s26 = sadd.s32 1, %s668_s24  ;;  %s672_s25 = sphi %s722_s25, %s20_s25   ;;  %s668_s24 = sphi %s720_s24, %s814_s24   ;;  %s664_s23 = sphi %s718_s23, %s813_s23  }
   0x7   : > { %p34_p0 = scmp.ge.s32.totalorder %s32_s26, 2  ;;  %p463_p1 = scmp.ge.s32.totalorder %s672_s25, 1 }
   0x8   : > { %p173_p2 = scmp.lt.s32.totalorder %s672_s25, 3  ;;  %p745_p4 = scmp.eq.s32.totalorder %s462_s0, 0 }
   0x9   : > { %s816_s26 = smov (%p34_p0, %s32_s26), 0  ;;  %s187_s7 = sshll.u32 %s805_s1, 4  ;;  %s188_s7 = int_to_ptr.hbm [resolvable:$true] %s187_s7 }
   0xa   : > { %p739_p3 = pnand %p463_p1, %p173_p2  ;;  %s674_s8 = smov [#allocation8]  }
   0xb   : > { %s189_s9 = sshll.u32 %s674_s8, 4  ;;  %s198_s12 = sshll.u32 %s806_s2, 4  ;;  %s190_s9 = int_to_ptr.vmem [resolvable:$true] %s189_s9  ;;  %s199_s12 = int_to_ptr.hbm [resolvable:$true] %s198_s12 }
   0xc   : > { %p502_p5 = pneg %p739_p3  ;;  %s675_s13 = smov [#allocation11]  }
   0xd   : > { %s200_s14 = sshll.u32 %s675_s13, 4  ;;  %s676_s15 = smov 64   ;;  %s201_s14 = int_to_ptr.vmem [resolvable:$true] %s200_s14 }
   0xe   : > { %p503_p6 = pnand %p745_p4, %p502_p5  ;;  %s677_s16 = smov 4  }
   0xf   : > { %225 = sbr.rel (%p739_p3) target bundleno = 273 (0x111), region = 40 }
  0x10   : > { %505 = dma.hbm_to_vmem [thread:$0]  (!%p503_p6), %s188_s7, 64, %s190_s9, [#allocation9]  }
  0x11   : > { %508 = dma.hbm_to_vmem [thread:$0]  (!%p503_p6), %s199_s12, 256, %s201_s14, [#allocation12], %s676_s15, %s676_s15, %s677_s16  }
  0x14   : > { %651 = dma.done.wait (%p745_p4), [#allocation9], 64  }
  0x15   : > { %653 = vsyncadd (%p745_p4), [#allocation9], 4294967232 }
  0x16   : > { %655 = dma.done.wait (%p745_p4), [#allocation12], 256  }
  0x17   : > { %657 = vsyncadd (%p745_p4), [#allocation12], 4294967040  ;;  %v487_v0 = vld [vmem:[#allocation11 + $0x8] sm:$0xff]  ;;  %v486_v1 = vld [vmem:[#allocation11] sm:$0xff]  ;;  %vm271_vm0 = vcmask 261120   ;;  %p288_p7 = scmp.eq.s32.totalorder %s664_s23, 0 }
  0x18   : > { %281 = vmatpush.bf16.msra.mxu0 %v487_v0  ;;  %v250_v2 = vld [vmem:[#allocation8] sm:$0xf]  ;;  %v545_v3 = vld [vmem:[%s807_s3] ss:$0 sm:$0xff]  ;;  %v678_v7 = vmov (%p288_p7), 0.0  }
  0x19   : > { %294 = vst [vmem:[#allocation2] sm:$0x1] (%p288_p7), %v678_v7 }
  0x1a   : > { %295 = vst [vmem:[#allocation3] sm:$0x1] (%p288_p7), %v678_v7 }
  0x1c   : > { %282 = vmatpush.bf16.msra.mxu0 %v486_v1 }
  0x1f   : > { %477 = vmatmul.msk.bf16.vlgmr.msra.gmra.mxu0 %vm271_vm0, %v250_v2 }
  0x9c   : > { %v284_v4 = vpop.f32.mrf.mxu0 }
  0x9d   : > { %v773_v5 = vadd.f32 %v545_v3, %v284_v4 }
  0xa0   : > { %293 = sbr.rel (!%p288_p7) target bundleno = 165 (0xa5), region = 52 }
  0xa4   : > { %v286_v6 = vpop.f32.mrf.mxu0 }
  0xa5 PF: > { %p479_p8 = scmp.ne.s32.totalorder %s664_s23, 0 }
  0xa7   : > { %298 = sbr.rel (%p479_p8) target bundleno = 189 (0xbd), region = 56 }
  0xac   : > { %v300_v8 = vrot.slane %v773_v5, 4  ;;  %v309_v9 = vmul.f32 %v773_v5, %v773_v5  ;;  %318 = vst [vmem:[#allocation13] sm:$0xff] %v773_v5  ;;  %v299_v18 = vld [vmem:[#allocation2] sm:$0x1]  ;;  %v308_v21 = vld [vmem:[#allocation3] sm:$0x1] }
  0xae   : > { %v301_v10 = vadd.f32 %v300_v8, %v773_v5  ;;  %v310_v11 = vrot.slane %v309_v9, 4 }
  0xb0   : > { %v302_v12 = vrot.slane %v301_v10, 2  ;;  %v311_v13 = vadd.f32 %v310_v11, %v309_v9 }
  0xb2   : > { %v303_v14 = vadd.f32 %v302_v12, %v301_v10  ;;  %v312_v15 = vrot.slane %v311_v13, 2 }
  0xb4   : > { %v304_v16 = vrot.slane %v303_v14, 1  ;;  %v313_v17 = vadd.f32 %v312_v15, %v311_v13 }
  0xb6   : > { %v305_v19 = vadd.f32 %v304_v16, %v303_v14  ;;  %v314_v20 = vrot.slane %v313_v17, 1 }
  0xb8   : > { %v306_v22 = vadd.f32 %v305_v19, %v299_v18  ;;  %v315_v23 = vadd.f32 %v314_v20, %v313_v17 }
  0xba   : > { %307 = vst [vmem:[#allocation2] sm:$0x1] %v306_v22  ;;  %v316_v24 = vadd.f32 %v315_v23, %v308_v21 }
  0xbc   : > { %317 = vst [vmem:[#allocation3] sm:$0x1] %v316_v24 }
  0xbd PF: > { %p319_p9 = scmp.eq.s32.totalorder %s664_s23, 1 }
  0xbe   : > { %v331_v38 = vld [vmem:[%s808_s4] sm:$0x1] (%p319_p9) }
  0xbf   : > { %323 = sbr.rel (!%p319_p9) target bundleno = 229 (0xe5), region = 60  ;;  %v345_v42 = vld [vmem:[%s809_s5] sm:$0x1] (%p319_p9) }
  0xc1   : > { %v324_v25 = vld [vmem:[#allocation2] sm:$0x1] (%p319_p9) }
  0xc2   : > { %v325_v27 = vmul.f32 (%p319_p9), 0.125, %v324_v25 }
  0xc3   : > { %v326_v26 = vld [vmem:[#allocation3] sm:$0x1] (%p319_p9) }
  0xc4   : > { %v327_v28 = vmul.f32 0.125, %v326_v26  ;;  %v328_v29 = vmul.f32 %v325_v27, %v325_v27 }
  0xc6   : > { %v329_v30 = vsub.f32 %v327_v28, %v328_v29 }
  0xc8   : > { %v330_v31 = vmax.f32 %v329_v30, 0.0 }
  0xca   : > { %v332_v32 = vadd.f32 1e-05, %v330_v31 }
  0xcc   : > { %546 = vrsqrt.f32 %v332_v32  ;;  %vm339_vm1 = vweird.f32 %v332_v32 }
  0xd2   : > { %v547_v33 = vpop.eup %546 }
  0xd3   : > { %v334_v34 = vmul.f32 %v547_v33, %v332_v32  ;;  %vm340_vm2 = vweird.f32 %v547_v33 }
  0xd4   : > { %vm341_vm3 = vmor %vm339_vm1, %vm340_vm2 }
  0xd5   : > { %v335_v35 = vmul.f32 %v547_v33, %v334_v34 }
  0xd7   : > { %v336_v36 = vmul.f32 0.5, %v335_v35 }
  0xd9   : > { %v337_v37 = vsub.f32 1.5, %v336_v36 }
  0xdb   : > { %v338_v39 = vmul.f32 %v547_v33, %v337_v37 }
  0xdd   : > { %v342_v40 = vsel %vm341_vm3, %v547_v33, %v338_v39 }
  0xde   : > { %v343_v41 = vmul.f32 %v342_v40, %v331_v38 }
  0xe0   : > { %344 = vst [vmem:[#allocation4] sm:$0x1] %v343_v41  ;;  %v346_v43 = vmul.f32 %v343_v41, %v325_v27 }
  0xe2   : > { %v347_v44 = vsub.f32 %v345_v42, %v346_v43 }
  0xe4   : > { %348 = vst [vmem:[#allocation5] sm:$0x1] %v347_v44 }
  0xe5 PF: > { %p481_p10 = scmp.ne.s32.totalorder %s664_s23, 1 }
  0xe6   : > { %s363_s27 = sld [smem:[#allocation7]] (!%p481_p10) }
  0xe7   : > { %351 = sbr.rel (%p481_p10) target bundleno = 267 (0x10b), region = 64 }
  0xec   : > { %v365_v45 = vlaneseq  ;;  %s373_s28 = smul.u32 2654435769, %s363_s27  ;;  %v548_v52 = vld [vmem:[#allocation4] ss:$0 sm:$0xff]  ;;  %v549_v56 = vld [vmem:[#allocation5] ss:$0 sm:$0xff] }
  0xed   : > { %v356_v55 = vmul.f32 %v548_v52, %v773_v5 }
  0xee   : > { %v366_v46 = vshrl.u32 %v365_v45, 7  ;;  %v370_v47 = vand.u32 127, %v365_v45  ;;  %v374_v50 = vstv %s373_s28 }
  0xef   : > { %v361_v59 = vadd.f32 %v549_v56, %v356_v55 }
  0xf0   : > { %v371_v48 = vmul.u32 128, %v366_v46 }
  0xf1   : > { %v362_v62 = vmax.f32 %v361_v59, 0.0 }
  0xf2   : > { %v372_v49 = vadd.s32 %v371_v48, %v370_v47 }
  0xf3   : > { %v386_v1 = vmul.f32 1.25, %v362_v62 }
  0xf4   : > { %v375_v51 = vadd.s32 %v374_v50, %v372_v49 }
  0xf6   : > { %v376_v53 = vshrl.u32 %v375_v51, 16 }
  0xf8   : > { %v377_v54 = vxor.u32 %v376_v53, %v375_v51 }
  0xfa   : > { %v378_v57 = vmul.u32 2146121005, %v377_v54 }
  0xfc   : > { %v379_v58 = vshrl.u32 %v378_v57, 15 }
  0xfe   : > { %v380_v60 = vxor.u32 %v379_v58, %v378_v57 }
 0x100   : > { %v381_v61 = vmul.u32 2221713035, %v380_v60 }
 0x102   : > { %v382_v63 = vshrl.u32 %v381_v61, 16 }
 0x104   : > { %v383_v0 = vxor.u32 %v382_v63, %v381_v61 }
 0x106   : > { %v384_v2 = vshrl.u32 %v383_v0, 8 }
 0x108   : > { %vm385_vm4 = vcmp.ge.s32.totalorder %v384_v2, 3355443 }
 0x109   : > { %v387_v3 = vsel %vm385_vm4, %v386_v1, 0.0 }
 0x10a   : > { %388 = vst [vmem:[#allocation13] sm:$0xff] %v387_v3 }
 0x10b PF: > { %p513_p11 = scmp.eq.s32.totalorder %s462_s0, 1  ;;  %s399_s30 = sshll.u32 %s810_s6, 4  ;;  %s400_s30 = int_to_ptr.hbm [resolvable:$true] %s399_s30 }
 0x10c   : > { %s679_s7 = smov [#allocation13]  }
 0x10d   : > { %s397_s8 = sshll.u32 %s679_s7, 4  ;;  %s398_s8 = int_to_ptr.vmem [resolvable:$true] %s397_s8 }
 0x10e   : > { %499 = dma.vmem_to_hbm [thread:$0]  (%p513_p11), %s398_s8, 128, %s400_s30, [#allocation10]  }
 0x10f   : > { %659 = dma.done.wait (%p513_p11), [#allocation10], 128  }
 0x110   : > { %661 = vsyncadd (%p513_p11), [#allocation10], 4294967168 }
 0x111 PF: > { %s20_s25 = sadd.s32 1, %s672_s25   ;;  %s813_s23 = smov %s668_s24 }
 0x112   : > { %p17_p12 = scmp.ge.s32.totalorder %s20_s25, 4   ;;  %s814_s24 = smov %s816_s26 }
 0x114   :  { %19 = sbr.rel (!%p17_p12) target bundleno = 6 (0x6), region = 91 }
 0x119   :  { %413 = vsyncpa [#allocation9], 1 }
 0x11a   :  { %415 = vsyncpa [#allocation9 + $0x1], 1 }
 0x11b   :  { %416 = vsyncpa [#allocation12], 1 }
 0x11c   :  { %417 = vsyncpa [#allocation10], 1 }
 0x11d   :  { %419 = vsyncpa [#allocation10 + $0x1], 1 }

</bundles_post_ra>
